<compile_context>
chip_gen: v5e
topology: v5e:2x2
jax: 0.10.0
libtpu: 0.0.40
codegen_flags: <defaults>
</compile_context>

<pallas_src>
import math
import functools

import jax
import jax.numpy as jnp
from jax import lax
from jax.experimental import pallas as pl
from jax.experimental.pallas import tpu as pltpu


def _layer_norm(x, a, b, eps):
    # Matches torch: a_2 * (x - mean) / (x.std(-1, unbiased=True) + eps) + b_2
    d = x.shape[-1]
    mean = jnp.mean(x, axis=-1, keepdims=True)
    diff = x - mean
    var = jnp.sum(diff * diff, axis=-1, keepdims=True) * (1.0 / (d - 1))
    std = jnp.sqrt(var)
    return a * diff / (std + eps) + b


def _encoder_layer_kernel(x_ref, mask_ref,
                          ln1_a_ref, ln1_b_ref,
                          wqkv_ref, bqkv_ref,
                          wo_ref, bo_ref,
                          ln2_a_ref, ln2_b_ref,
                          w1_ref, b1_ref, w2_ref, b2_ref,
                          out_ref, *, num_heads, eps):
    x = x_ref[0]                               # (S, D) float32
    seq, d_model = x.shape
    dh = d_model // num_heads
    inv_sqrt_dh = 1.0 / math.sqrt(dh)

    # ---------- sublayer 0: x + self_attn(LayerNorm(x), ..., mask) ----------
    xn = _layer_norm(x, ln1_a_ref[...], ln1_b_ref[...], eps)

    # Fused Q/K/V projection: one MXU pass over the concatenated (D, 3D) weight.
    qkv = jnp.dot(xn, wqkv_ref[...],
                  preferred_element_type=jnp.float32) + bqkv_ref[...]
    q = qkv[:, :d_model] * inv_sqrt_dh         # fold 1/sqrt(d_k) into Q once
    k = qkv[:, d_model:2 * d_model]
    v = qkv[:, 2 * d_model:]

    masked = mask_ref[0] == 0.0                # (1, S) keep/masked, hoisted out of loop

    dn = (((1,), (1,)), ((), ()))              # contract last dims: a @ b.T
    head_outs = []
    for h in range(num_heads):                 # static, unrolled head loop
        lo, hi = h * dh, (h + 1) * dh
        qh = q[:, lo:hi]
        kh = k[:, lo:hi]
        vh = v[:, lo:hi]
        s = lax.dot_general(qh, kh, dn,
                            preferred_element_type=jnp.float32)          # (S, S)
        s = jnp.where(masked, -1e9, s)                                   # masked_fill
        m = jnp.max(s, axis=-1, keepdims=True)
        p = jnp.exp(s - m)
        denom = jnp.sum(p, axis=-1, keepdims=True)
        # Normalize after the PV matmul: divide (S, dh) instead of (S, S).
        head_outs.append(jnp.dot(p, vh,
                                 preferred_element_type=jnp.float32) / denom)

    # concat(heads) @ Wo as one full-contraction matmul (K = D, single MXU pass).
    ctx = jnp.concatenate(head_outs, axis=-1)                            # (S, D)
    attn = jnp.dot(ctx, wo_ref[...],
                   preferred_element_type=jnp.float32) + bo_ref[...]
    # TODO(synk): dropout is a no-op (eval/inference mode); training dropout would need pltpu.prng_*.
    x1 = x + attn

    # ---------- sublayer 1: x1 + feed_forward(LayerNorm(x1)) ----------
    x1n = _layer_norm(x1, ln2_a_ref[...], ln2_b_ref[...], eps)
    hid = jnp.dot(x1n, w1_ref[...],
                  preferred_element_type=jnp.float32) + b1_ref[...]
    hid = jnp.maximum(hid, 0.0)                                          # ReLU
    ffn = jnp.dot(hid, w2_ref[...],
                  preferred_element_type=jnp.float32) + b2_ref[...]

    out_ref[0] = (x1 + ffn).astype(out_ref.dtype)


def encoder_layer_forward(x, mask, params, *, num_heads, eps=1e-6):
    """x: (B, S, D) f32; mask: (B, 1, S) f32 (1=keep, 0=masked); params: dict of weights."""
    b, s, d = x.shape

    def row(p):                                 # 1-D params -> (1, N) 2-D VMEM blocks
        return p.reshape(1, -1)

    # Fuse the three projection weights once on the wrapper side (one-time cost).
    wqkv = jnp.concatenate([params["wq"], params["wk"], params["wv"]], axis=1)  # (D, 3D)
    bqkv = jnp.concatenate([params["bq"], params["bk"], params["bv"]]).reshape(1, -1)

    inputs = (
        x,
        mask,
        row(params["ln1_a"]), row(params["ln1_b"]),
        wqkv, bqkv,
        params["wo"], row(params["bo"]),
        row(params["ln2_a"]), row(params["ln2_b"]),
        params["w1"], row(params["b1"]),
        params["w2"], row(params["b2"]),
    )

    def bcast_spec(shape):
        nd = len(shape)
        return pl.BlockSpec(shape, lambda i, _nd=nd: (0,) * _nd)

    in_specs = [
        pl.BlockSpec((1, s, d), lambda i: (i, 0, 0)),   # x: one batch element per step
        pl.BlockSpec((1, 1, s), lambda i: (i, 0, 0)),   # mask row for this batch element
    ] + [bcast_spec(a.shape) for a in inputs[2:]]       # weights broadcast every step

    kernel = functools.partial(_encoder_layer_kernel, num_heads=num_heads, eps=eps)

    out = pl.pallas_call(
        kernel,
        out_shape=jax.ShapeDtypeStruct((b, s, d), x.dtype),
        grid_spec=pltpu.PrefetchScalarGridSpec(
            num_scalar_prefetch=0,
            grid=(b,),
            in_specs=in_specs,
            out_specs=pl.BlockSpec((1, s, d), lambda i: (i, 0, 0)),
        ),
        compiler_params=pltpu.CompilerParams(
            dimension_semantics=("parallel",),
        ),
    )(*inputs)
    return out


def encoder_layer_reference(x, mask, p, *, num_heads, eps=1e-6):
    """Plain-JAX reference with PyTorch EncoderLayer semantics (dropout = identity)."""
    def ln(v, a, b):
        d = v.shape[-1]
        mean = v.mean(-1, keepdims=True)
        diff = v - mean
        std = jnp.sqrt((diff * diff).sum(-1, keepdims=True) / (d - 1))
        return a * diff / (std + eps) + b

    bsz, s, d = x.shape
    dh = d // num_heads

    xn = ln(x, p["ln1_a"], p["ln1_b"])
    q = xn @ p["wq"] + p["bq"]
    k = xn @ p["wk"] + p["bk"]
    v = xn @ p["wv"] + p["bv"]
    q = q.reshape(bsz, s, num_heads, dh).transpose(0, 2, 1, 3)
    k = k.reshape(bsz, s, num_heads, dh).transpose(0, 2, 1, 3)
    v = v.reshape(bsz, s, num_heads, dh).transpose(0, 2, 1, 3)
    scores = jnp.einsum("bhqd,bhkd->bhqk", q, k) / math.sqrt(dh)
    scores = jnp.where(mask[:, None, :, :] == 0.0, -1e9, scores)
    attn = jax.nn.softmax(scores, axis=-1)
    o = jnp.einsum("bhqk,bhkd->bhqd", attn, v)
    o = o.transpose(0, 2, 1, 3).reshape(bsz, s, d)
    o = o @ p["wo"] + p["bo"]
    x1 = x + o

    x1n = ln(x1, p["ln2_a"], p["ln2_b"])
    ffn = jnp.maximum(x1n @ p["w1"] + p["b1"], 0.0) @ p["w2"] + p["b2"]
    return x1 + ffn


if __name__ == "__main__":
    # Small deterministic shapes consistent with the module.
    d_model = 32
    num_heads = 4
    d_ff = 64
    batch, seq = 2, 8
    eps = 1e-6

    key = jax.random.PRNGKey(0)
    keys = jax.random.split(key, 16)

    def init(k, shape, scale=0.1):
        return scale * jax.random.normal(k, shape, dtype=jnp.float32)

    params = {
        "ln1_a": 1.0 + init(keys[0], (d_model,)),
        "ln1_b": init(keys[1], (d_model,)),
        "wq": init(keys[2], (d_model, d_model)),
        "bq": init(keys[3], (d_model,)),
        "wk": init(keys[4], (d_model, d_model)),
        "bk": init(keys[5], (d_model,)),
        "wv": init(keys[6], (d_model, d_model)),
        "bv": init(keys[7], (d_model,)),
        "wo": init(keys[8], (d_model, d_model)),
        "bo": init(keys[9], (d_model,)),
        "ln2_a": 1.0 + init(keys[10], (d_model,)),
        "ln2_b": init(keys[11], (d_model,)),
        "w1": init(keys[12], (d_model, d_ff)),
        "b1": init(keys[13], (d_ff,)),
        "w2": init(keys[14], (d_ff, d_model)),
        "b2": init(keys[15], (d_model,)),
    }

    x = jax.random.normal(jax.random.fold_in(key, 100),
                          (batch, seq, d_model), dtype=jnp.float32)

    # Padding-style source mask (B, 1, S): batch 1 has its last two key positions masked.
    mask = jnp.ones((batch, 1, seq), jnp.float32)
    mask = mask.at[1, 0, seq - 2:].set(0.0)

    out = encoder_layer_forward(x, mask, params, num_heads=num_heads, eps=eps)
    out = jax.block_until_ready(out)

    ref = encoder_layer_reference(x, mask, params, num_heads=num_heads, eps=eps)

    assert out.shape == (batch, seq, d_model)
    assert jnp.allclose(out, ref, atol=1e-4, rtol=1e-4), "mismatch vs reference"

    print("KERNEL_OK")
</pallas_src>

<mosaic_0001>
module attributes {stable_mosaic.version = 11 : i64} {
  func.func @_encoder_layer_kernel(%arg0: i32, %arg1: memref<1x8x32xf32, #tpu.memory_space<vmem>>, %arg2: memref<1x1x8xf32, #tpu.memory_space<vmem>>, %arg3: memref<1x32xf32, #tpu.memory_space<vmem>>, %arg4: memref<1x32xf32, #tpu.memory_space<vmem>>, %arg5: memref<32x96xf32, #tpu.memory_space<vmem>>, %arg6: memref<1x96xf32, #tpu.memory_space<vmem>>, %arg7: memref<32x32xf32, #tpu.memory_space<vmem>>, %arg8: memref<1x32xf32, #tpu.memory_space<vmem>>, %arg9: memref<1x32xf32, #tpu.memory_space<vmem>>, %arg10: memref<1x32xf32, #tpu.memory_space<vmem>>, %arg11: memref<32x64xf32, #tpu.memory_space<vmem>>, %arg12: memref<1x64xf32, #tpu.memory_space<vmem>>, %arg13: memref<64x32xf32, #tpu.memory_space<vmem>>, %arg14: memref<1x32xf32, #tpu.memory_space<vmem>>, %arg15: memref<1x8x32xf32, #tpu.memory_space<vmem>>) attributes {dimension_semantics = [#tpu.dimension_semantics<parallel>], iteration_bounds = array<i64: 2>, scalar_prefetch = 0 : i64, scratch_operands = 0 : i64, tpu.core_type = #tpu.core_type<tc>, window_params = [{transform_indices = @transform_0, window_bounds = array<i64: 1, 8, 32>}, {transform_indices = @transform_1, window_bounds = array<i64: 1, 1, 8>}, {pipeline_mode = #tpu.pipeline_mode<synchronous>, transform_indices = @transform_2, window_bounds = array<i64: 1, 32>}, {pipeline_mode = #tpu.pipeline_mode<synchronous>, transform_indices = @transform_3, window_bounds = array<i64: 1, 32>}, {pipeline_mode = #tpu.pipeline_mode<synchronous>, transform_indices = @transform_4, window_bounds = array<i64: 32, 96>}, {pipeline_mode = #tpu.pipeline_mode<synchronous>, transform_indices = @transform_5, window_bounds = array<i64: 1, 96>}, {pipeline_mode = #tpu.pipeline_mode<synchronous>, transform_indices = @transform_6, window_bounds = array<i64: 32, 32>}, {pipeline_mode = #tpu.pipeline_mode<synchronous>, transform_indices = @transform_7, window_bounds = array<i64: 1, 32>}, {pipeline_mode = #tpu.pipeline_mode<synchronous>, transform_indices = @transform_8, window_bounds = array<i64: 1, 32>}, {pipeline_mode = #tpu.pipeline_mode<synchronous>, transform_indices = @transform_9, window_bounds = array<i64: 1, 32>}, {pipeline_mode = #tpu.pipeline_mode<synchronous>, transform_indices = @transform_10, window_bounds = array<i64: 32, 64>}, {pipeline_mode = #tpu.pipeline_mode<synchronous>, transform_indices = @transform_11, window_bounds = array<i64: 1, 64>}, {pipeline_mode = #tpu.pipeline_mode<synchronous>, transform_indices = @transform_12, window_bounds = array<i64: 64, 32>}, {pipeline_mode = #tpu.pipeline_mode<synchronous>, transform_indices = @transform_13, window_bounds = array<i64: 1, 32>}, {transform_indices = @transform_14, window_bounds = array<i64: 1, 8, 32>}]} {
    %c0 = arith.constant 0 : index
    %c0_0 = arith.constant 0 : index
    %c0_1 = arith.constant 0 : index
    %0 = vector.load %arg1[%c0, %c0_0, %c0_1] : memref<1x8x32xf32, #tpu.memory_space<vmem>>, vector<1x8x32xf32>
    %1 = vector.shape_cast %0 : vector<1x8x32xf32> to vector<8x32xf32>
    %c0_2 = arith.constant 0 : index
    %c0_3 = arith.constant 0 : index
    %2 = vector.load %arg3[%c0_2, %c0_3] : memref<1x32xf32, #tpu.memory_space<vmem>>, vector<1x32xf32>
    %c0_4 = arith.constant 0 : index
    %c0_5 = arith.constant 0 : index
    %3 = vector.load %arg4[%c0_4, %c0_5] : memref<1x32xf32, #tpu.memory_space<vmem>>, vector<1x32xf32>
    %cst = arith.constant dense<0.000000e+00> : vector<8xf32>
    %4 = vector.multi_reduction <add>, %1, %cst [1] : vector<8x32xf32> to vector<8xf32>
    %5 = vector.shape_cast %4 : vector<8xf32> to vector<8x1xf32>
    %cst_6 = arith.constant 3.200000e+01 : f32
    %6 = vector.broadcast %cst_6 : f32 to vector<8x1xf32>
    %7 = arith.divf %5, %6 : vector<8x1xf32>
    %8 = vector.broadcast %7 : vector<8x1xf32> to vector<8x32xf32>
    %9 = arith.subf %1, %8 : vector<8x32xf32>
    %10 = arith.mulf %9, %9 : vector<8x32xf32>
    %cst_7 = arith.constant dense<0.000000e+00> : vector<8xf32>
    %11 = vector.multi_reduction <add>, %10, %cst_7 [1] : vector<8x32xf32> to vector<8xf32>
    %12 = vector.shape_cast %11 : vector<8xf32> to vector<8x1xf32>
    %cst_8 = arith.constant 0.0322580636 : f32
    %13 = vector.broadcast %cst_8 : f32 to vector<8x1xf32>
    %14 = arith.mulf %12, %13 : vector<8x1xf32>
    %15 = math.sqrt %14 : vector<8x1xf32>
    %16 = vector.broadcast %2 : vector<1x32xf32> to vector<8x32xf32>
    %17 = arith.mulf %16, %9 : vector<8x32xf32>
    %cst_9 = arith.constant 9.99999997E-7 : f32
    %18 = vector.broadcast %cst_9 : f32 to vector<8x1xf32>
    %19 = arith.addf %15, %18 : vector<8x1xf32>
    %20 = vector.broadcast %19 : vector<8x1xf32> to vector<8x32xf32>
    %21 = arith.divf %17, %20 : vector<8x32xf32>
    %22 = vector.broadcast %3 : vector<1x32xf32> to vector<8x32xf32>
    %23 = arith.addf %21, %22 : vector<8x32xf32>
    %c0_10 = arith.constant 0 : index
    %c0_11 = arith.constant 0 : index
    %24 = vector.load %arg5[%c0_10, %c0_11] : memref<32x96xf32, #tpu.memory_space<vmem>>, vector<32x96xf32>
    %cst_12 = arith.constant dense<0.000000e+00> : vector<8x96xf32>
    %25 = tpu.matmul %23, %24, %cst_12 {dimension_numbers = #tpu.dot_dimension_numbers<[1], [0], [0], [1], [0, 0, 1, 1], [], []>} : vector<8x32xf32>, vector<32x96xf32>, vector<8x96xf32> -> vector<8x96xf32>
    %c0_13 = arith.constant 0 : index
    %c0_14 = arith.constant 0 : index
    %26 = vector.load %arg6[%c0_13, %c0_14] : memref<1x96xf32, #tpu.memory_space<vmem>>, vector<1x96xf32>
    %27 = vector.broadcast %26 : vector<1x96xf32> to vector<8x96xf32>
    %28 = arith.addf %25, %27 : vector<8x96xf32>
    %29 = vector.extract_strided_slice %28 {offsets = [0, 0], sizes = [8, 32], strides = [1, 1]} : vector<8x96xf32> to vector<8x32xf32>
    %cst_15 = arith.constant 0.353553385 : f32
    %30 = vector.broadcast %cst_15 : f32 to vector<8x32xf32>
    %31 = arith.mulf %29, %30 : vector<8x32xf32>
    %32 = vector.extract_strided_slice %28 {offsets = [0, 32], sizes = [8, 32], strides = [1, 1]} : vector<8x96xf32> to vector<8x32xf32>
    %33 = vector.extract_strided_slice %28 {offsets = [0, 64], sizes = [8, 32], strides = [1, 1]} : vector<8x96xf32> to vector<8x32xf32>
    %c0_16 = arith.constant 0 : index
    %c0_17 = arith.constant 0 : index
    %c0_18 = arith.constant 0 : index
    %34 = vector.load %arg2[%c0_16, %c0_17, %c0_18] : memref<1x1x8xf32, #tpu.memory_space<vmem>>, vector<1x1x8xf32>
    %35 = vector.shape_cast %34 : vector<1x1x8xf32> to vector<1x8xf32>
    %cst_19 = arith.constant 0.000000e+00 : f32
    %36 = vector.broadcast %cst_19 : f32 to vector<1x8xf32>
    %37 = arith.cmpf oeq, %35, %36 : vector<1x8xf32>
    %38 = vector.extract_strided_slice %31 {offsets = [0, 0], sizes = [8, 8], strides = [1, 1]} : vector<8x32xf32> to vector<8x8xf32>
    %39 = vector.extract_strided_slice %32 {offsets = [0, 0], sizes = [8, 8], strides = [1, 1]} : vector<8x32xf32> to vector<8x8xf32>
    %40 = vector.extract_strided_slice %33 {offsets = [0, 0], sizes = [8, 8], strides = [1, 1]} : vector<8x32xf32> to vector<8x8xf32>
    %cst_20 = arith.constant dense<0.000000e+00> : vector<8x8xf32>
    %41 = tpu.matmul %38, %39, %cst_20 {dimension_numbers = #tpu.dot_dimension_numbers<[1], [1], [0], [0], [0, 0, 1, 0], [], []>} : vector<8x8xf32>, vector<8x8xf32>, vector<8x8xf32> -> vector<8x8xf32>
    %cst_21 = arith.constant -1.000000e+09 : f32
    %42 = vector.shape_cast %37 : vector<1x8xi1> to vector<1x8xi1>
    %43 = vector.broadcast %42 : vector<1x8xi1> to vector<8x8xi1>
    %44 = vector.broadcast %cst_21 : f32 to vector<8x8xf32>
    %45 = arith.select %43, %44, %41 : vector<8x8xi1>, vector<8x8xf32>
    %cst_22 = arith.constant dense<0xFF800000> : vector<8xf32>
    %46 = vector.multi_reduction <maximumf>, %45, %cst_22 [1] : vector<8x8xf32> to vector<8xf32>
    %47 = vector.shape_cast %46 : vector<8xf32> to vector<8x1xf32>
    %48 = vector.broadcast %47 : vector<8x1xf32> to vector<8x8xf32>
    %49 = arith.subf %45, %48 : vector<8x8xf32>
    %50 = math.exp %49 : vector<8x8xf32>
    %cst_23 = arith.constant dense<0.000000e+00> : vector<8xf32>
    %51 = vector.multi_reduction <add>, %50, %cst_23 [1] : vector<8x8xf32> to vector<8xf32>
    %52 = vector.shape_cast %51 : vector<8xf32> to vector<8x1xf32>
    %cst_24 = arith.constant dense<0.000000e+00> : vector<8x8xf32>
    %53 = tpu.matmul %50, %40, %cst_24 {dimension_numbers = #tpu.dot_dimension_numbers<[1], [0], [0], [1], [0, 0, 1, 1], [], []>} : vector<8x8xf32>, vector<8x8xf32>, vector<8x8xf32> -> vector<8x8xf32>
    %54 = vector.broadcast %52 : vector<8x1xf32> to vector<8x8xf32>
    %55 = arith.divf %53, %54 : vector<8x8xf32>
    %56 = vector.extract_strided_slice %31 {offsets = [0, 8], sizes = [8, 8], strides = [1, 1]} : vector<8x32xf32> to vector<8x8xf32>
    %57 = vector.extract_strided_slice %32 {offsets = [0, 8], sizes = [8, 8], strides = [1, 1]} : vector<8x32xf32> to vector<8x8xf32>
    %58 = vector.extract_strided_slice %33 {offsets = [0, 8], sizes = [8, 8], strides = [1, 1]} : vector<8x32xf32> to vector<8x8xf32>
    %cst_25 = arith.constant dense<0.000000e+00> : vector<8x8xf32>
    %59 = tpu.matmul %56, %57, %cst_25 {dimension_numbers = #tpu.dot_dimension_numbers<[1], [1], [0], [0], [0, 0, 1, 0], [], []>} : vector<8x8xf32>, vector<8x8xf32>, vector<8x8xf32> -> vector<8x8xf32>
    %cst_26 = arith.constant -1.000000e+09 : f32
    %60 = vector.shape_cast %37 : vector<1x8xi1> to vector<1x8xi1>
    %61 = vector.broadcast %60 : vector<1x8xi1> to vector<8x8xi1>
    %62 = vector.broadcast %cst_26 : f32 to vector<8x8xf32>
    %63 = arith.select %61, %62, %59 : vector<8x8xi1>, vector<8x8xf32>
    %cst_27 = arith.constant dense<0xFF800000> : vector<8xf32>
    %64 = vector.multi_reduction <maximumf>, %63, %cst_27 [1] : vector<8x8xf32> to vector<8xf32>
    %65 = vector.shape_cast %64 : vector<8xf32> to vector<8x1xf32>
    %66 = vector.broadcast %65 : vector<8x1xf32> to vector<8x8xf32>
    %67 = arith.subf %63, %66 : vector<8x8xf32>
    %68 = math.exp %67 : vector<8x8xf32>
    %cst_28 = arith.constant dense<0.000000e+00> : vector<8xf32>
    %69 = vector.multi_reduction <add>, %68, %cst_28 [1] : vector<8x8xf32> to vector<8xf32>
    %70 = vector.shape_cast %69 : vector<8xf32> to vector<8x1xf32>
    %cst_29 = arith.constant dense<0.000000e+00> : vector<8x8xf32>
    %71 = tpu.matmul %68, %58, %cst_29 {dimension_numbers = #tpu.dot_dimension_numbers<[1], [0], [0], [1], [0, 0, 1, 1], [], []>} : vector<8x8xf32>, vector<8x8xf32>, vector<8x8xf32> -> vector<8x8xf32>
    %72 = vector.broadcast %70 : vector<8x1xf32> to vector<8x8xf32>
    %73 = arith.divf %71, %72 : vector<8x8xf32>
    %74 = vector.extract_strided_slice %31 {offsets = [0, 16], sizes = [8, 8], strides = [1, 1]} : vector<8x32xf32> to vector<8x8xf32>
    %75 = vector.extract_strided_slice %32 {offsets = [0, 16], sizes = [8, 8], strides = [1, 1]} : vector<8x32xf32> to vector<8x8xf32>
    %76 = vector.extract_strided_slice %33 {offsets = [0, 16], sizes = [8, 8], strides = [1, 1]} : vector<8x32xf32> to vector<8x8xf32>
    %cst_30 = arith.constant dense<0.000000e+00> : vector<8x8xf32>
    %77 = tpu.matmul %74, %75, %cst_30 {dimension_numbers = #tpu.dot_dimension_numbers<[1], [1], [0], [0], [0, 0, 1, 0], [], []>} : vector<8x8xf32>, vector<8x8xf32>, vector<8x8xf32> -> vector<8x8xf32>
    %cst_31 = arith.constant -1.000000e+09 : f32
    %78 = vector.shape_cast %37 : vector<1x8xi1> to vector<1x8xi1>
    %79 = vector.broadcast %78 : vector<1x8xi1> to vector<8x8xi1>
    %80 = vector.broadcast %cst_31 : f32 to vector<8x8xf32>
    %81 = arith.select %79, %80, %77 : vector<8x8xi1>, vector<8x8xf32>
    %cst_32 = arith.constant dense<0xFF800000> : vector<8xf32>
    %82 = vector.multi_reduction <maximumf>, %81, %cst_32 [1] : vector<8x8xf32> to vector<8xf32>
    %83 = vector.shape_cast %82 : vector<8xf32> to vector<8x1xf32>
    %84 = vector.broadcast %83 : vector<8x1xf32> to vector<8x8xf32>
    %85 = arith.subf %81, %84 : vector<8x8xf32>
    %86 = math.exp %85 : vector<8x8xf32>
    %cst_33 = arith.constant dense<0.000000e+00> : vector<8xf32>
    %87 = vector.multi_reduction <add>, %86, %cst_33 [1] : vector<8x8xf32> to vector<8xf32>
    %88 = vector.shape_cast %87 : vector<8xf32> to vector<8x1xf32>
    %cst_34 = arith.constant dense<0.000000e+00> : vector<8x8xf32>
    %89 = tpu.matmul %86, %76, %cst_34 {dimension_numbers = #tpu.dot_dimension_numbers<[1], [0], [0], [1], [0, 0, 1, 1], [], []>} : vector<8x8xf32>, vector<8x8xf32>, vector<8x8xf32> -> vector<8x8xf32>
    %90 = vector.broadcast %88 : vector<8x1xf32> to vector<8x8xf32>
    %91 = arith.divf %89, %90 : vector<8x8xf32>
    %92 = vector.extract_strided_slice %31 {offsets = [0, 24], sizes = [8, 8], strides = [1, 1]} : vector<8x32xf32> to vector<8x8xf32>
    %93 = vector.extract_strided_slice %32 {offsets = [0, 24], sizes = [8, 8], strides = [1, 1]} : vector<8x32xf32> to vector<8x8xf32>
    %94 = vector.extract_strided_slice %33 {offsets = [0, 24], sizes = [8, 8], strides = [1, 1]} : vector<8x32xf32> to vector<8x8xf32>
    %cst_35 = arith.constant dense<0.000000e+00> : vector<8x8xf32>
    %95 = tpu.matmul %92, %93, %cst_35 {dimension_numbers = #tpu.dot_dimension_numbers<[1], [1], [0], [0], [0, 0, 1, 0], [], []>} : vector<8x8xf32>, vector<8x8xf32>, vector<8x8xf32> -> vector<8x8xf32>
    %cst_36 = arith.constant -1.000000e+09 : f32
    %96 = vector.shape_cast %37 : vector<1x8xi1> to vector<1x8xi1>
    %97 = vector.broadcast %96 : vector<1x8xi1> to vector<8x8xi1>
    %98 = vector.broadcast %cst_36 : f32 to vector<8x8xf32>
    %99 = arith.select %97, %98, %95 : vector<8x8xi1>, vector<8x8xf32>
    %cst_37 = arith.constant dense<0xFF800000> : vector<8xf32>
    %100 = vector.multi_reduction <maximumf>, %99, %cst_37 [1] : vector<8x8xf32> to vector<8xf32>
    %101 = vector.shape_cast %100 : vector<8xf32> to vector<8x1xf32>
    %102 = vector.broadcast %101 : vector<8x1xf32> to vector<8x8xf32>
    %103 = arith.subf %99, %102 : vector<8x8xf32>
    %104 = math.exp %103 : vector<8x8xf32>
    %cst_38 = arith.constant dense<0.000000e+00> : vector<8xf32>
    %105 = vector.multi_reduction <add>, %104, %cst_38 [1] : vector<8x8xf32> to vector<8xf32>
    %106 = vector.shape_cast %105 : vector<8xf32> to vector<8x1xf32>
    %cst_39 = arith.constant dense<0.000000e+00> : vector<8x8xf32>
    %107 = tpu.matmul %104, %94, %cst_39 {dimension_numbers = #tpu.dot_dimension_numbers<[1], [0], [0], [1], [0, 0, 1, 1], [], []>} : vector<8x8xf32>, vector<8x8xf32>, vector<8x8xf32> -> vector<8x8xf32>
    %108 = vector.broadcast %106 : vector<8x1xf32> to vector<8x8xf32>
    %109 = arith.divf %107, %108 : vector<8x8xf32>
    %110 = tpu.concatenate %55, %73, %91, %109 in 1 : vector<8x8xf32>, vector<8x8xf32>, vector<8x8xf32>, vector<8x8xf32> -> vector<8x32xf32>
    %c0_40 = arith.constant 0 : index
    %c0_41 = arith.constant 0 : index
    %111 = vector.load %arg7[%c0_40, %c0_41] : memref<32x32xf32, #tpu.memory_space<vmem>>, vector<32x32xf32>
    %cst_42 = arith.constant dense<0.000000e+00> : vector<8x32xf32>
    %112 = tpu.matmul %110, %111, %cst_42 {dimension_numbers = #tpu.dot_dimension_numbers<[1], [0], [0], [1], [0, 0, 1, 1], [], []>} : vector<8x32xf32>, vector<32x32xf32>, vector<8x32xf32> -> vector<8x32xf32>
    %c0_43 = arith.constant 0 : index
    %c0_44 = arith.constant 0 : index
    %113 = vector.load %arg8[%c0_43, %c0_44] : memref<1x32xf32, #tpu.memory_space<vmem>>, vector<1x32xf32>
    %114 = vector.broadcast %113 : vector<1x32xf32> to vector<8x32xf32>
    %115 = arith.addf %112, %114 : vector<8x32xf32>
    %116 = arith.addf %1, %115 : vector<8x32xf32>
    %c0_45 = arith.constant 0 : index
    %c0_46 = arith.constant 0 : index
    %117 = vector.load %arg9[%c0_45, %c0_46] : memref<1x32xf32, #tpu.memory_space<vmem>>, vector<1x32xf32>
    %c0_47 = arith.constant 0 : index
    %c0_48 = arith.constant 0 : index
    %118 = vector.load %arg10[%c0_47, %c0_48] : memref<1x32xf32, #tpu.memory_space<vmem>>, vector<1x32xf32>
    %cst_49 = arith.constant dense<0.000000e+00> : vector<8xf32>
    %119 = vector.multi_reduction <add>, %116, %cst_49 [1] : vector<8x32xf32> to vector<8xf32>
    %120 = vector.shape_cast %119 : vector<8xf32> to vector<8x1xf32>
    %cst_50 = arith.constant 3.200000e+01 : f32
    %121 = vector.broadcast %cst_50 : f32 to vector<8x1xf32>
    %122 = arith.divf %120, %121 : vector<8x1xf32>
    %123 = vector.broadcast %122 : vector<8x1xf32> to vector<8x32xf32>
    %124 = arith.subf %116, %123 : vector<8x32xf32>
    %125 = arith.mulf %124, %124 : vector<8x32xf32>
    %cst_51 = arith.constant dense<0.000000e+00> : vector<8xf32>
    %126 = vector.multi_reduction <add>, %125, %cst_51 [1] : vector<8x32xf32> to vector<8xf32>
    %127 = vector.shape_cast %126 : vector<8xf32> to vector<8x1xf32>
    %cst_52 = arith.constant 0.0322580636 : f32
    %128 = vector.broadcast %cst_52 : f32 to vector<8x1xf32>
    %129 = arith.mulf %127, %128 : vector<8x1xf32>
    %130 = math.sqrt %129 : vector<8x1xf32>
    %131 = vector.broadcast %117 : vector<1x32xf32> to vector<8x32xf32>
    %132 = arith.mulf %131, %124 : vector<8x32xf32>
    %cst_53 = arith.constant 9.99999997E-7 : f32
    %133 = vector.broadcast %cst_53 : f32 to vector<8x1xf32>
    %134 = arith.addf %130, %133 : vector<8x1xf32>
    %135 = vector.broadcast %134 : vector<8x1xf32> to vector<8x32xf32>
    %136 = arith.divf %132, %135 : vector<8x32xf32>
    %137 = vector.broadcast %118 : vector<1x32xf32> to vector<8x32xf32>
    %138 = arith.addf %136, %137 : vector<8x32xf32>
    %c0_54 = arith.constant 0 : index
    %c0_55 = arith.constant 0 : index
    %139 = vector.load %arg11[%c0_54, %c0_55] : memref<32x64xf32, #tpu.memory_space<vmem>>, vector<32x64xf32>
    %cst_56 = arith.constant dense<0.000000e+00> : vector<8x64xf32>
    %140 = tpu.matmul %138, %139, %cst_56 {dimension_numbers = #tpu.dot_dimension_numbers<[1], [0], [0], [1], [0, 0, 1, 1], [], []>} : vector<8x32xf32>, vector<32x64xf32>, vector<8x64xf32> -> vector<8x64xf32>
    %c0_57 = arith.constant 0 : index
    %c0_58 = arith.constant 0 : index
    %141 = vector.load %arg12[%c0_57, %c0_58] : memref<1x64xf32, #tpu.memory_space<vmem>>, vector<1x64xf32>
    %142 = vector.broadcast %141 : vector<1x64xf32> to vector<8x64xf32>
    %143 = arith.addf %140, %142 : vector<8x64xf32>
    %cst_59 = arith.constant 0.000000e+00 : f32
    %144 = vector.broadcast %cst_59 : f32 to vector<8x64xf32>
    %145 = arith.maximumf %143, %144 : vector<8x64xf32>
    %c0_60 = arith.constant 0 : index
    %c0_61 = arith.constant 0 : index
    %146 = vector.load %arg13[%c0_60, %c0_61] : memref<64x32xf32, #tpu.memory_space<vmem>>, vector<64x32xf32>
    %cst_62 = arith.constant dense<0.000000e+00> : vector<8x32xf32>
    %147 = tpu.matmul %145, %146, %cst_62 {dimension_numbers = #tpu.dot_dimension_numbers<[1], [0], [0], [1], [0, 0, 1, 1], [], []>} : vector<8x64xf32>, vector<64x32xf32>, vector<8x32xf32> -> vector<8x32xf32>
    %c0_63 = arith.constant 0 : index
    %c0_64 = arith.constant 0 : index
    %148 = vector.load %arg14[%c0_63, %c0_64] : memref<1x32xf32, #tpu.memory_space<vmem>>, vector<1x32xf32>
    %149 = vector.broadcast %148 : vector<1x32xf32> to vector<8x32xf32>
    %150 = arith.addf %147, %149 : vector<8x32xf32>
    %151 = arith.addf %116, %150 : vector<8x32xf32>
    %c0_65 = arith.constant 0 : index
    %c0_66 = arith.constant 0 : index
    %c0_67 = arith.constant 0 : index
    %152 = vector.load %arg15[%c0_65, %c0_66, %c0_67] : memref<1x8x32xf32, #tpu.memory_space<vmem>>, vector<1x8x32xf32>
    %153 = vector.shape_cast %152 : vector<1x8x32xf32> to vector<8x32xf32>
    %154 = vector.shape_cast %151 : vector<8x32xf32> to vector<1x8x32xf32>
    tpu.vector_store %arg15[%c0_65, %c0_66, %c0_67], %154 {strides = array<i32>} : memref<1x8x32xf32, #tpu.memory_space<vmem>>, vector<1x8x32xf32>,
    return
  }
  func.func @transform_0(%arg0: i32) -> (i32, i32, i32) {
    %c0_i32 = arith.constant 0 : i32
    %c0_i32_0 = arith.constant 0 : i32
    %c0_i32_1 = arith.constant 0 : i32
    return %arg0, %c0_i32, %c0_i32_0 : i32, i32, i32
  }
  func.func @transform_1(%arg0: i32) -> (i32, i32, i32) {
    %c0_i32 = arith.constant 0 : i32
    %c0_i32_0 = arith.constant 0 : i32
    %c0_i32_1 = arith.constant 0 : i32
    return %arg0, %c0_i32, %c0_i32_0 : i32, i32, i32
  }
  func.func @transform_2(%arg0: i32) -> (i32, i32) {
    %c0_i32 = arith.constant 0 : i32
    %c0_i32_0 = arith.constant 0 : i32
    %c0_i32_1 = arith.constant 0 : i32
    return %c0_i32, %c0_i32_0 : i32, i32
  }
  func.func @transform_3(%arg0: i32) -> (i32, i32) {
    %c0_i32 = arith.constant 0 : i32
    %c0_i32_0 = arith.constant 0 : i32
    %c0_i32_1 = arith.constant 0 : i32
    return %c0_i32, %c0_i32_0 : i32, i32
  }
  func.func @transform_4(%arg0: i32) -> (i32, i32) {
    %c0_i32 = arith.constant 0 : i32
    %c0_i32_0 = arith.constant 0 : i32
    %c0_i32_1 = arith.constant 0 : i32
    return %c0_i32, %c0_i32_0 : i32, i32
  }
  func.func @transform_5(%arg0: i32) -> (i32, i32) {
    %c0_i32 = arith.constant 0 : i32
    %c0_i32_0 = arith.constant 0 : i32
    %c0_i32_1 = arith.constant 0 : i32
    return %c0_i32, %c0_i32_0 : i32, i32
  }
  func.func @transform_6(%arg0: i32) -> (i32, i32) {
    %c0_i32 = arith.constant 0 : i32
    %c0_i32_0 = arith.constant 0 : i32
    %c0_i32_1 = arith.constant 0 : i32
    return %c0_i32, %c0_i32_0 : i32, i32
  }
  func.func @transform_7(%arg0: i32) -> (i32, i32) {
    %c0_i32 = arith.constant 0 : i32
    %c0_i32_0 = arith.constant 0 : i32
    %c0_i32_1 = arith.constant 0 : i32
    return %c0_i32, %c0_i32_0 : i32, i32
  }
  func.func @transform_8(%arg0: i32) -> (i32, i32) {
    %c0_i32 = arith.constant 0 : i32
    %c0_i32_0 = arith.constant 0 : i32
    %c0_i32_1 = arith.constant 0 : i32
    return %c0_i32, %c0_i32_0 : i32, i32
  }
  func.func @transform_9(%arg0: i32) -> (i32, i32) {
    %c0_i32 = arith.constant 0 : i32
    %c0_i32_0 = arith.constant 0 : i32
    %c0_i32_1 = arith.constant 0 : i32
    return %c0_i32, %c0_i32_0 : i32, i32
  }
  func.func @transform_10(%arg0: i32) -> (i32, i32) {
    %c0_i32 = arith.constant 0 : i32
    %c0_i32_0 = arith.constant 0 : i32
    %c0_i32_1 = arith.constant 0 : i32
    return %c0_i32, %c0_i32_0 : i32, i32
  }
  func.func @transform_11(%arg0: i32) -> (i32, i32) {
    %c0_i32 = arith.constant 0 : i32
    %c0_i32_0 = arith.constant 0 : i32
    %c0_i32_1 = arith.constant 0 : i32
    return %c0_i32, %c0_i32_0 : i32, i32
  }
  func.func @transform_12(%arg0: i32) -> (i32, i32) {
    %c0_i32 = arith.constant 0 : i32
    %c0_i32_0 = arith.constant 0 : i32
    %c0_i32_1 = arith.constant 0 : i32
    return %c0_i32, %c0_i32_0 : i32, i32
  }
  func.func @transform_13(%arg0: i32) -> (i32, i32) {
    %c0_i32 = arith.constant 0 : i32
    %c0_i32_0 = arith.constant 0 : i32
    %c0_i32_1 = arith.constant 0 : i32
    return %c0_i32, %c0_i32_0 : i32, i32
  }
  func.func @transform_14(%arg0: i32) -> (i32, i32, i32) {
    %c0_i32 = arith.constant 0 : i32
    %c0_i32_0 = arith.constant 0 : i32
    %c0_i32_1 = arith.constant 0 : i32
    return %arg0, %c0_i32, %c0_i32_0 : i32, i32, i32
  }
}

</mosaic_0001>

<bundles_post_ra>
// kernel: tpu_custom_call.1
= control target key start
LH: loop header
LB: loop body
LE: loop exit
PB: predicated region body
PF: predicated region fallthrough
CT: control target
= control target key end

     0   :  { %s1956_s0 = inlined_call_operand.hbm [shape: f32[2,8,32], index: 0, kind: input, shape index: {}]   ;;  %s1957_s1 = inlined_call_operand.hbm [shape: f32[2,1,8], index: 1, kind: input, shape index: {}]   ;;  %s1958_s2 = inlined_call_operand.vmem [shape: f32[1,32], index: 2, kind: input, shape index: {}]   ;;  %s1959_s3 = inlined_call_operand.hbm [shape: f32[1,32], index: 3, kind: input, shape index: {}]   ;;  %s1960_s4 = inlined_call_operand.vmem [shape: f32[32,96], index: 4, kind: input, shape index: {}]   ;;  %s1961_s5 = inlined_call_operand.vmem [shape: f32[1,96], index: 5, kind: input, shape index: {}]   ;;  %s1962_s6 = inlined_call_operand.vmem [shape: f32[32,32], index: 6, kind: input, shape index: {}]   ;;  %s1963_s7 = inlined_call_operand.vmem [shape: f32[1,32], index: 7, kind: input, shape index: {}]   ;;  %s1964_s8 = inlined_call_operand.vmem [shape: f32[1,32], index: 8, kind: input, shape index: {}]   ;;  %s1965_s9 = inlined_call_operand.vmem [shape: f32[1,32], index: 9, kind: input, shape index: {}]   ;;  %s1966_s10 = inlined_call_operand.vmem [shape: f32[32,64], index: 10, kind: input, shape index: {}]   ;;  %s1967_s11 = inlined_call_operand.vmem [shape: f32[1,64], index: 11, kind: input, shape index: {}]   ;;  %s1968_s12 = inlined_call_operand.vmem [shape: f32[64,32], index: 12, kind: input, shape index: {}]   ;;  %s1969_s13 = inlined_call_operand.vmem [shape: f32[1,32], index: 13, kind: input, shape index: {}]   ;;  %s1970_s14 = inlined_call_operand.hbm [shape: f32[2,8,32], index: 14, kind: output, shape index: {}]  }
   0x1   :  { %1980 = sst [smem:[#allocation20_spill]] %s1959_s3 }
   0x2   :  { %1981 = sst [smem:[#allocation21_spill]] %s1964_s8 }
   0x3   :  { %1982 = sst [smem:[#allocation22_spill]] %s1965_s9 }
   0x4   :  { %1983 = sst [smem:[#allocation23_spill]] %s1967_s11 }
   0x5   :  { %1984 = sst [smem:[#allocation24_spill]] %s1969_s13 }
   0x6   :  { %1985 = sst [smem:[#allocation25_spill]] %s1970_s14 }
   0x7   :  { %19 = vsyncpa [#allocation3], 0 }
   0x8   :  { %21 = vsyncpa [#allocation3 + $0x1], 0 }
   0x9   :  { %22 = vsyncpa [#allocation6], 0 }
   0xa   :  { %24 = vsyncpa [#allocation6 + $0x1], 0 }
   0xb   :  { %25 = vsyncpa [#allocation4], 0 }
   0xc   :  { %27 = vsyncpa [#allocation4 + $0x1], 0  ;;  %s1626_s29 = smov 0   ;;  %s1628_s30 = smov 0  }
   0xd   :  { %s1630_s15 = smov 0   ;;  %s1632_s16 = smov 0  }
   0xe LB: > { %1986 = sst [smem:[#allocation13_spill]] %s1520_s29  ;;  %s1647_s17 = sadd.s32 4294967295, %s1532_s16   ;;  %s1532_s16 = sphi %s1632_s16, %s2011_s16   ;;  %s1528_s15 = sphi %s1630_s15, %s2013_s15   ;;  %s1524_s30 = sphi %s1628_s30, %s2015_s30   ;;  %s1520_s29 = sphi %s1626_s29, %s2014_s29  }
   0xf   : > { %1987 = sst [smem:[#allocation14_spill]] %s1528_s15  ;;  %s1226_s18 = sadd.s32 4294967294, %s1532_s16  }
  0x10   : > { %1988 = sst [smem:[#allocation15_spill]] %s1532_s16  ;;  %p53_p0 = scmp.ne.s32.totalorder %s1524_s30, %s1520_s29 }
  0x11   : > { %p54_p1 = scmp.eq.s32.totalorder %s1647_s17, 0  ;;  %p355_p2 = scmp.eq.s32.totalorder %s1647_s17, 1 }
  0x12   : > { %p361_p3 = scmp.eq.s32.totalorder %s1226_s18, 1  ;;  %p1227_p5 = scmp.ge.s32.totalorder %s1532_s16, 1 }
  0x13   : > { %p1656_p4 = por %p54_p1, %p53_p0  ;;  %p368_p7 = scmp.lt.s32.totalorder %s1532_s16, 3 }
  0x14   : > { %p1661_p6 = por %p361_p3, %p53_p0  ;;  %s1992_s3 = sld [smem:[#allocation20_spill]] }
  0x15   : > { %p1669_p8 = pnand %p1227_p5, %p368_p7  ;;  %s1534_s25 = smov [#allocation7]  }
  0x16   : > { %s1990_s20 = scalar_select %p1661_p6, 1, 0 }
  0x17   : > { %p1266_p10 = pneg %p1669_p8  ;;  %s385_s26 = sshll.u32 %s1534_s25, 4  ;;  %s386_s26 = int_to_ptr.vmem [resolvable:$true] %s385_s26 }
  0x18   : > { %1991 = sst [smem:[#allocation16_spill]] %s1990_s20  ;;  %s1679_s27 = sadd.s32 1, %s1532_s16  }
  0x19   : > { %p1267_p11 = pnand %p1266_p10, %p54_p1  ;;  %1994 = sst [smem:[#allocation17_spill]] %s1679_s27 }
  0x1a   : > { %s383_s23 = sshll.u32 %s1992_s3, 4  ;;  %s40_s28 = sadd.s32 1, %s1528_s15  ;;  %s384_s23 = int_to_ptr.hbm [resolvable:$true] %s383_s23 }
  0x1b   : > { %s37_s18 = ssub.s32 %s1532_s16, %s1679_s27  ;;  %p47_p13 = scmp.ne.s32.totalorder %s1528_s15, %s1524_s30 }
  0x1c   : > { %1269 = dma.hbm_to_vmem [thread:$0]  (!%p1267_p11), %s384_s23, 16, %s386_s26, [#allocation6]  }
  0x1d   : > { %p38_p12 = scmp.eq.s32.totalorder %s37_s18, 0  ;;  %p48_p0 = scmp.eq.s32.totalorder %s1532_s16, 0 }
  0x1e   : > { %p1282_p3 = scmp.lt.s32.totalorder %s1532_s16, 2  ;;  %p1693_p7 = por %p355_p2, %p47_p13 }
  0x1f   : > { %s1689_s21 = scalar_select %p38_p12, %s1528_s15, %s40_s28  }
  0x20   : > { %p49_p5 = por %p48_p0, %p47_p13  ;;  %s1698_s25 = sand.u32 1, %s1528_s15  }
  0x21   : > { %1995 = sst [smem:[#allocation18_spill]] %s1689_s21  ;;  %s1231_s23 = sshll.u32 %s1532_s16, 3 }
  0x22   : > { %s1996_s22 = scalar_select %p1693_p7, 1, 0 }
  0x23   : > { %s1230_s26 = sshll.u32 %s1698_s25, 3  ;;  %s434_s27 = scalar_lea.hbm %s1956_s0, %s1231_s23 }
  0x24   : > { %1997 = sst [smem:[#allocation19_spill]] %s1996_s22  ;;  %s436_s20 = sshll.u32 %s434_s27, 4  ;;  %s437_s20 = int_to_ptr.hbm [resolvable:$true] %s436_s20 }
  0x25   : > { %s430_s29 = scalar_lea.vmem [#allocation2], %s1230_s26  ;;  %p1707_p2 = pnand %p1282_p3, %p49_p5 }
  0x26   : > { %s438_s28 = sshll.u32 %s430_s29, 4  ;;  %s445_s15 = sand.u32 1, %s1532_s16   ;;  %s439_s28 = int_to_ptr.vmem [resolvable:$true] %s438_s28 }
  0x27   : > { %s451_s13 = scalar_lea.hbm %s1957_s1, %s1532_s16  ;;  %s427_s11 = scalar_lea.sflag [#allocation3], %s1698_s25 }
  0x28   : > { %s1398_s3 = sshra.s32 %s437_s20, 4  ;;  %p1402_p11 = pneg %p1707_p2  ;;  %s1399_s3 = int_to_ptr.hbm [resolvable:$true] %s1398_s3 }
  0x29   : > { %s1400_s27 = scalar_lea.hbm %s1399_s3, 8  ;;  %s1405_s26 = scalar_lea.hbm %s1956_s0, 16 }
  0x2a   : > { %p1401_p10 = scmp.ne.s32.totalorder %s1399_s3, %s1400_s27  ;;  %p1406_p0 = scmp.lt.s32.totalorder %s1399_s3, %s1956_s0 }
  0x2b   : > { %p1407_p3 = scmp.lt.s32.totalorder %s1405_s26, %s1400_s27 }
  0x2c   : > { %p1403_p12 = pnand %p1402_p11, %p1401_p10 }
  0x2d   : > { %p1408_p5 = por %p1407_p3, %p1406_p0 }
  0x2e   : > { %p1404_p13 = pneg %p1403_p12 }
  0x30   : > { %p1409_p9 = pnand %p1408_p5, %p1404_p13 }
  0x32   : > { %1412 = shalt.err (!%p1409_p9)
}
  0x33   : > { %1273 = dma.hbm_to_vmem [thread:$0]  (!%p1707_p2), %s437_s20, 128, %s439_s28, %s427_s11  }
  0x34   : > { %s453_s14 = sshll.u32 %s451_s13, 4  ;;  %s448_s22 = scalar_lea.vmem [#allocation5], %s1698_s25  ;;  %s454_s14 = int_to_ptr.hbm [resolvable:$true] %s453_s14 }
  0x35   : > { %s455_s16 = sshll.u32 %s448_s22, 4  ;;  %s446_s29 = scalar_lea.sflag [#allocation6], %s445_s15  ;;  %s456_s16 = int_to_ptr.vmem [resolvable:$true] %s455_s16 }
  0x36   : > { %s1428_s23 = sshra.s32 %s454_s14, 4  ;;  %s1435_s27 = scalar_lea.hbm %s1957_s1, 2  ;;  %s1429_s23 = int_to_ptr.hbm [resolvable:$true] %s1428_s23 }
  0x37   : > { %s1430_s8 = scalar_lea.hbm %s1429_s23, 1  ;;  %p1436_p9 = scmp.lt.s32.totalorder %s1429_s23, %s1957_s1 }
  0x38   : > { %p1431_p10 = scmp.ne.s32.totalorder %s1429_s23, %s1430_s8  ;;  %p1437_p0 = scmp.lt.s32.totalorder %s1435_s27, %s1430_s8 }
  0x3a   : > { %p1433_p12 = pnand %p1431_p10, %p1402_p11  ;;  %p1438_p3 = por %p1437_p0, %p1436_p9 }
  0x3c   : > { %p1434_p13 = pneg %p1433_p12 }
  0x3e   : > { %p1439_p5 = pnand %p1438_p3, %p1434_p13 }
  0x40   : > { %1442 = shalt.err (!%p1439_p5)
}
  0x41   : > { %1276 = dma.hbm_to_vmem [thread:$0]  (!%p1707_p2), %s454_s14, 16, %s456_s16, %s446_s29  }
  0x42   : > { %464 = sbr.rel (%p1669_p8) target bundleno = 2085 (0x825), region = 76  ;;  %s1745_s13 = sand.u32 (!%p1669_p8), 1, %s1524_s30  }
  0x43   : > { %s1233_s15 = sshll.u32 (!%p1669_p8), %s1745_s13, 3  ;;  %s467_s20 = scalar_lea.sflag (!%p1669_p8), [#allocation3], %s1745_s13 }
  0x44   : > { %s470_s8 = scalar_lea.vmem (!%p1669_p8), [#allocation2], %s1233_s15 }
  0x47   : > { %1503 = dma.done.wait (%p1656_p4), %s467_s20, 128  }
  0x48   : > { %1505 = vsyncadd (%p1656_p4), %s467_s20, 4294967168  ;;  %s476_s16 = sand.u32 1, %s1647_s17   ;;  %s479_s21 = scalar_lea.vmem [#allocation5], %s1745_s13 }
  0x49   : > { %s477_s24 = scalar_lea.sflag [#allocation6], %s476_s16 }
  0x4a   : > { %1507 = dma.done.wait (%p1656_p4), %s477_s24, 16  }
  0x4b   : > { %1509 = vsyncadd (%p1656_p4), %s477_s24, 4294967280 }
  0x4c   : > { %1511 = dma.done.wait (%p54_p1), [#allocation6], 16  }
  0x4d   : > { %1513 = vsyncadd (%p54_p1), [#allocation6], 4294967280  ;;  %vm537_vm0 = vcmask 261120   ;;  %v1765_v0 = vld [vmem:[%s470_s8] sm:$0xff]  ;;  %v1535_v2 = vmov 32.0   ;;  %v594_v14 = vld [vmem:[%s1960_s4 + $0x18] sm:$0xff] }
  0x4e   : > { %v538_v1 = vsel %vm537_vm0, %v1765_v0, 0.0  ;;  %1342 = vrcp.f32 %v1535_v2  ;;  %v593_v15 = vld [vmem:[%s1960_s4 + $0x10] sm:$0xff]  ;;  %614 = vmatpush.msra.mxu0 %v594_v14  ;;  %v592_v16 = vld [vmem:[%s1960_s4 + $0x8] sm:$0xff]  ;;  %v591_v17 = vld [vmem:[%s1960_s4] sm:$0xff]  ;;  %s1536_s11 = smov 56   ;;  %s1537_s20 = smov 96  }
  0x4f   : > { %539 = vadd.xlane.f32.xlu0 %v538_v1  ;;  %v1334_v35 = vld [vmem:[%s1958_s2] ss:$0 sm:$0xff]  ;;  %v1335_v42 = vld [vmem:[#allocation7] ss:$0 sm:$0xff]  ;;  %s1538_s8 = smov 120   ;;  %s1539_s16 = smov 88  }
  0x50   : > { %615 = vmatpush.msra.mxu0 %v593_v15  ;;  %v1336_v46 = vld [vmem:[%s1961_s5] ss:$0 sm:$0xff]  ;;  %s1540_s24 = smov 64   ;;  %s1541_s19 = smov 72   ;;  %vm628_vm8 = vcmask 64512   ;;  %v1544_v59 = vmov 0  }
  0x51   : > { %s1542_s25 = smov 104   ;;  %s1543_s28 = smov 80   ;;  %v623_v58 = vld [vmem:[%s479_s21] sm:$0x1] }
  0x52   : > { %616 = vmatpush.msra.mxu0 %v592_v16  ;;  %vm624_vm9 = vcmp.eq.f32.partialorder %v623_v58, 0.0  ;;  %s1545_s21 = smov 112   ;;  %s1546_s18 = smov 48  }
  0x53   : > { %v654_v60 = vsel %vm624_vm9, 1, %v1544_v59  ;;  %s1547_s14 = smov 8   ;;  %s1548_s22 = smov 40  }
  0x54   : > { %v1343_v3 = vpop.eup %1342  ;;  %617 = vmatpush.msra.mxu0 %v591_v17  ;;  %v655_v61 = vperm.slane %v654_v60, 0  ;;  %s1549_s29 = smov 16   ;;  %s1550_s23 = smov 24  }
  0x55   : > { %v542_v4 = vmul.f32 32.0, %v1343_v3  ;;  %vm546_vm1 = vweird.f32 %v1343_v3 }
  0x56   : > { %vm1809_vm10 = vcmp.eq.s32.totalorder %v655_v61, 1 }
  0x57   : > { %v543_v5 = vsub.f32 1.0, %v542_v4 }
  0x59   : > { %v544_v6 = vmul.f32 %v1343_v3, %v543_v5 }
  0x5b   : > { %v545_v7 = vadd.f32 %v1343_v3, %v544_v6 }
  0x5d   : > { %v1769_v8 = vsel %vm546_vm1, %v1343_v3, %v545_v7 }
  0xc2   : > { %v540_v9 = vpop.xlane.xlu0 %539 }
  0xc3   : > { %v548_v10 = vmul.f32 %v1769_v8, %v540_v9 }
  0xc5   : > { %v549_v11 = vsub.f32 %v1765_v0, %v548_v10 }
  0xc7   : > { %v550_v12 = vmul.f32 %v549_v11, %v549_v11  ;;  %v570_v40 = vmul.f32 %v1334_v35, %v549_v11 }
  0xc9   : > { %v551_v13 = vsel %vm537_vm0, %v550_v12, 0.0 }
  0xca   : > { %552 = vadd.xlane.f32.xlu0 %v551_v13 }
 0x13d   : > { %v553_v18 = vpop.xlane.xlu0 %552 }
 0x13e   : > { %v554_v19 = vmul.f32 0.032258064, %v553_v18 }
 0x140   : > { %1344 = vrsqrt.f32 %v554_v19  ;;  %vm562_vm2 = vcmp.eq.f32.partialorder %v554_v19, inf  ;;  %v565_v27 = vand.u32 2147483648, %v554_v19  ;;  %vm564_vm3 = vcmp.eq.f32.partialorder %v554_v19, 0.0 }
 0x146   : > { %v1345_v20 = vpop.eup %1344 }
 0x147   : > { %v556_v21 = vmul.f32 %v1345_v20, %v554_v19 }
 0x149   : > { %v557_v22 = vmul.f32 %v1345_v20, %v556_v21 }
 0x14b   : > { %v558_v23 = vmul.f32 0.5, %v557_v22 }
 0x14d   : > { %v559_v24 = vsub.f32 1.5, %v558_v23 }
 0x14f   : > { %v560_v25 = vmul.f32 %v1345_v20, %v559_v24 }
 0x151   : > { %v561_v26 = vmul.f32 %v560_v25, %v554_v19 }
 0x153   : > { %v563_v28 = vsel %vm562_vm2, %v554_v19, %v561_v26 }
 0x154   : > { %v566_v29 = vsel %vm564_vm3, %v565_v27, %v563_v28 }
 0x155   : > { %v571_v30 = vadd.f32 1e-06, %v566_v29 }
 0x157   : > { %1346 = vrcp.f32 %v571_v30  ;;  %v583_v34 = vand.u32 2147483648, %v571_v30  ;;  %v581_v37 = vand.u32 2147483647, %v571_v30  ;;  %vm577_vm5 = vweird.f32 %v571_v30 }
 0x159   : > { %v584_v39 = vor.u32 1.1754944e-38, %v583_v34  ;;  %vm582_vm7 = vcmp.eq.f32.partialorder %v581_v37, 8.507059e+37 }
 0x15d   : > { %v1347_v31 = vpop.eup %1346 }
 0x15e   : > { %v573_v32 = vmul.f32 %v1347_v31, %v571_v30  ;;  %vm578_vm4 = vweird.f32 %v1347_v31 }
 0x15f   : > { %vm579_vm6 = vmor %vm577_vm5, %vm578_vm4 }
 0x160   : > { %v574_v33 = vsub.f32 1.0, %v573_v32 }
 0x162   : > { %v575_v36 = vmul.f32 %v1347_v31, %v574_v33 }
 0x164   : > { %v576_v38 = vadd.f32 %v1347_v31, %v575_v36 }
 0x166   : > { %v580_v41 = vsel %vm579_vm6, %v1347_v31, %v576_v38 }
 0x167   : > { %v585_v43 = vsel %vm582_vm7, %v584_v39, %v580_v41 }
 0x168   : > { %v586_v44 = vmul.f32 %v585_v43, %v570_v40 }
 0x16a   : > { %v590_v45 = vadd.f32 %v1335_v42, %v586_v44 }
 0x16c   : > { %1236 = vmatmul.msk.f32.vlgmr.msra.gmra.mxu0 %vm537_vm0, %v590_v45 }
 0x1e9   : > { %v619_v47 = vpop.f32.mrf.mxu0 }
 0x1ea   : > { %v1793_v48 = vadd.f32 %v1336_v46, %v619_v47 }
 0x1ec   : > { %746 = vrot.lane.b32.xlu0 %v1793_v48, %s1536_s11  ;;  %626 = vrot.lane.b32.xlu1 %v1793_v48, %s1537_s20  ;;  %v622_v49 = vmul.f32 0.35355338, %v1793_v48 }
 0x1ee   : > { %708 = vrot.lane.b32.xlu2 %v622_v49, %s1538_s8  ;;  %s2003_s8 = sld [smem:[#allocation23_spill]] }
 0x1f4   : > { %710 = vrot.lane.b32.xlu1 %v1793_v48, %s1539_s16  ;;  %s1253_s16 = sshll.u32 %s1647_s17, 3  ;;  %s1113_s17 = scalar_lea.sflag [#allocation4], %s1745_s13 }
 0x1fc   : > { %667 = vrot.lane.b32.xlu1 %v1793_v48, %s1540_s24 }
 0x204   : > { %868 = vrot.lane.b32.xlu1 %v1793_v48, %s1541_s19 }
 0x20c   : > { %866 = vrot.lane.b32.xlu1 %v622_v49, %s1542_s25  ;;  %s2004_s25 = sld [smem:[#allocation24_spill]] }
 0x214   : > { %789 = vrot.lane.b32.xlu1 %v1793_v48, %s1543_s28 }
 0x248   : > { %v709_v52 = vpop.permute.xlu2 %708 }
 0x25e   : > { %v627_v50 = vpop.permute.xlu1 %626  ;;  %v747_v54 = vpop.permute.xlu0 %746 }
 0x25f   : > { %1237 = vmatpush.xpose.msk.msra.mxu1 %vm628_vm8, %v627_v50 }
 0x262   : > { %1238 = vmatmul.msk.f32.vlgmr.msra.gmra.mxu1 %vm628_vm8, %v622_v49 }
 0x266   : > { %v711_v51 = vpop.permute.xlu1 %710 }
 0x267   : > { %1240 = vmatpush.xpose.msk.msra.mxu3 %vm628_vm8, %v711_v51 }
 0x26a   : > { %1241 = vmatmul.msk.f32.vlgmr.msra.gmra.mxu3 %vm628_vm8, %v709_v52 }
 0x26e   : > { %v668_v53 = vpop.permute.xlu1 %667 }
 0x26f   : > { %688 = vmatpush.msra.mxu2 %v668_v53 }
 0x271   : > { %767 = vmatpush.msrb.mxu2 %v747_v54 }
 0x276   : > { %v869_v55 = vpop.permute.xlu1 %868 }
 0x27e   : > { %v867_v56 = vpop.permute.xlu1 %866 }
 0x286   : > { %v790_v57 = vpop.permute.xlu1 %789 }
 0x287   : > { %1243 = vmatpush.xpose.msk.msrb.mxu1 %vm628_vm8, %v790_v57 }
 0x2df   : > { %v651_v63 = vpop.f32.mrf.mxu1 }
 0x2e0   : > { %v657_v1 = vsel %vm1809_vm10, -1e+09, %v651_v63 }
 0x2e1   : > { %v658_v2 = vsel %vm628_vm8, %v657_v1, -inf }
 0x2e2   : > { %659 = vmax.xlane.f32.xlu2 %v658_v2 }
 0x2ed   : > { %v733_v3 = vpop.f32.mrf.mxu3 }
 0x2ee   : > { %v736_v4 = vsel %vm1809_vm10, -1e+09, %v733_v3 }
 0x2ef   : > { %v737_v5 = vsel %vm628_vm8, %v736_v4, -inf }
 0x2f0   : > { %738 = vmax.xlane.f32.xlu0 %v737_v5 }
 0x304   : > { %787 = vrot.lane.b32.xlu0 %v622_v49, %s1545_s21  ;;  %s2001_s21 = sld [smem:[#allocation21_spill]] }
 0x30c   : > { %825 = vrot.lane.b32.xlu0 %v1793_v48, %s1546_s18  ;;  %s2005_s18 = sld [smem:[#allocation25_spill]] }
 0x355   : > { %v660_v6 = vpop.xlane.xlu2 %659 }
 0x356   : > { %v661_v7 = vsub.f32 %v657_v1, %v660_v6 }
 0x358   : > { %v662_v9 = vmul.f32 1.442695, %v661_v7 }
 0x35a   : > { %1348 = vpow2.f32 %v662_v9 }
 0x360   : > { %v1820_v10 = vpop.eup %1348 }
 0x361   : > { %1239 = vmatmul.msk.f32.vlgmr.msra.gmra.mxu2 %vm628_vm8, %v1820_v10  ;;  %v664_v49 = vsel %vm628_vm8, %v1820_v10, 0.0 }
 0x362   : > { %1246 = vmatpush.xpose.msk.msra.mxu2 %vm628_vm8, %v869_v55 }
 0x363   : > { %v739_v11 = vpop.xlane.xlu0 %738 }
 0x364   : > { %v740_v12 = vsub.f32 %v736_v4, %v739_v11 }
 0x366   : > { %v741_v13 = vmul.f32 1.442695, %v740_v12 }
 0x368   : > { %1350 = vpow2.f32 %v741_v13 }
 0x36e   : > { %v1351_v14 = vpop.eup %1350 }
 0x36f   : > { %1242 = vmatmul.msk.f32.vlgmr.msrb.gmra.mxu2 %vm628_vm8, %v1351_v14  ;;  %v743_v15 = vsel %vm628_vm8, %v1351_v14, 0.0 }
 0x370   : > { %744 = vadd.xlane.f32.xlu0 %v743_v15  ;;  %v965_v15 = vld [vmem:[%s1962_s6 + $0x18] sm:$0xff] }
 0x371   : > { %985 = vmatpush.msra.mxu1 %v965_v15 }
 0x376   : > { %v788_v16 = vpop.permute.xlu0 %787 }
 0x377   : > { %1244 = vmatmul.msk.f32.vlgmr.msrb.gmra.mxu1 %vm628_vm8, %v788_v16  ;;  %1247 = vmatmul.msk.f32.vlgmr.msra.gmra.mxu2 %vm628_vm8, %v867_v56  ;;  %v964_v16 = vld [vmem:[%s1962_s6 + $0x10] sm:$0xff] }
 0x378   : > { %986 = vmatpush.msra.mxu1 %v964_v16 }
 0x37e   : > { %v826_v17 = vpop.permute.xlu0 %825 }
 0x37f   : > { %846 = vmatpush.msrb.mxu3 %v826_v17  ;;  %v963_v17 = vld [vmem:[%s1962_s6 + $0x8] sm:$0xff] }
 0x380   : > { %987 = vmatpush.msra.mxu1 %v963_v17 }
 0x3e3   : > { %v745_v18 = vpop.xlane.xlu0 %744 }
 0x3e4   : > { %1352 = vrcp.f32 %v745_v18  ;;  %v1829_v20 = vpop.f32.mrf.mxu2  ;;  %v783_v23 = vand.u32 2147483648, %v745_v18  ;;  %v781_v25 = vand.u32 2147483647, %v745_v18  ;;  %vm777_vm12 = vweird.f32 %v745_v18 }
 0x3e6   : > { %v784_v28 = vor.u32 1.1754944e-38, %v783_v23  ;;  %vm782_vm14 = vcmp.eq.f32.partialorder %v781_v25, 8.507059e+37 }
 0x3ea   : > { %v1353_v19 = vpop.eup %1352 }
 0x3eb   : > { %v773_v21 = vmul.f32 %v1353_v19, %v745_v18  ;;  %vm778_vm11 = vweird.f32 %v1353_v19  ;;  %v962_v18 = vld [vmem:[%s1962_s6] sm:$0xff] }
 0x3ec   : > { %vm779_vm13 = vmor %vm777_vm12, %vm778_vm11  ;;  %988 = vmatpush.msra.mxu1 %v962_v18 }
 0x3ed   : > { %v774_v22 = vsub.f32 1.0, %v773_v21 }
 0x3ef   : > { %v775_v24 = vmul.f32 %v1353_v19, %v774_v22 }
 0x3f1   : > { %v776_v26 = vadd.f32 %v1353_v19, %v775_v24 }
 0x3f2   : > { %v769_v27 = vpop.f32.mrf.mxu2 }
 0x3f3   : > { %v780_v29 = vsel %vm779_vm13, %v1353_v19, %v776_v26  ;;  %vm958_vm13 = vcmask 130048  }
 0x3f4   : > { %v785_v30 = vsel %vm782_vm14, %v784_v28, %v780_v29  ;;  %v812_v31 = vpop.f32.mrf.mxu1  ;;  %vm960_vm14 = vcmask 195584  }
 0x3f5   : > { %v786_v32 = vmul.f32 %v785_v30, %v769_v27  ;;  %v815_v33 = vsel %vm1809_vm10, -1e+09, %v812_v31 }
 0x3f6   : > { %v816_v34 = vsel %vm628_vm8, %v815_v33, -inf }
 0x3f7   : > { %817 = vmax.xlane.f32.xlu1 %v816_v34  ;;  %946 = vrot.lane.b32.xlu0 %v786_v32, %s1547_s14 }
 0x3fa   : > { %v891_v35 = vpop.f32.mrf.mxu2 }
 0x3fb   : > { %v894_v36 = vsel %vm1809_vm10, -1e+09, %v891_v35 }
 0x3fc   : > { %v895_v37 = vsel %vm628_vm8, %v894_v36, -inf }
 0x3fd   : > { %896 = vmax.xlane.f32.xlu2 %v895_v37  ;;  %v1337_v37 = vld [vmem:[%s1963_s7] ss:$0 sm:$0xff] }
 0x415   : > { %904 = vrot.lane.b32.xlu2 %v1793_v48, %s1548_s22  ;;  %s2002_s22 = sld [smem:[#allocation22_spill]] }
 0x41b   : > { %v1339_v15 = vld [vmem:[%s2002_s22] ss:$0 sm:$0xff]  ;;  %s1123_s22 = scalar_lea.hbm %s2005_s18, %s1253_s16 }
 0x41c   : > { %s1127_s9 = sshll.u32 %s1123_s22, 4  ;;  %s1128_s9 = int_to_ptr.hbm [resolvable:$true] %s1127_s9 }
 0x41d   : > { %s1472_s3 = sshra.s32 %s1128_s9, 4  ;;  %s1473_s3 = int_to_ptr.hbm [resolvable:$true] %s1472_s3 }
 0x41e   : > { %s1474_s27 = scalar_lea.hbm %s1473_s3, 8  ;;  %p1479_p2 = scmp.lt.s32.totalorder %s1473_s3, %s2005_s18 }
 0x41f   : > { %p1475_p1 = scmp.ne.s32.totalorder %s1473_s3, %s1474_s27 }
 0x421   : > { %p1476_p4 = pnand %p1475_p1, %p1693_p7 }
 0x423   : > { %p1477_p8 = pneg %p1476_p4 }
 0x469   : > { %v947_v29 = vpop.permute.xlu0 %946 }
 0x46a   : > { %v818_v38 = vpop.xlane.xlu1 %817 }
 0x46b   : > { %v819_v39 = vsub.f32 %v815_v33, %v818_v38 }
 0x46d   : > { %v820_v40 = vmul.f32 1.442695, %v819_v39 }
 0x46f   : > { %1354 = vpow2.f32 %v820_v40 }
 0x470   : > { %v897_v41 = vpop.xlane.xlu2 %896 }
 0x471   : > { %v898_v42 = vsub.f32 %v894_v36, %v897_v41 }
 0x473   : > { %v899_v43 = vmul.f32 1.442695, %v898_v42 }
 0x475   : > { %v1355_v44 = vpop.eup %1354  ;;  %1356 = vpow2.f32 %v899_v43 }
 0x476   : > { %1245 = vmatmul.msk.f32.vlgmr.msrb.gmra.mxu3 %vm628_vm8, %v1355_v44  ;;  %v822_v45 = vsel %vm628_vm8, %v1355_v44, 0.0 }
 0x477   : > { %823 = vadd.xlane.f32.xlu2 %v822_v45 }
 0x478   : > { %v905_v46 = vpop.permute.xlu2 %904 }
 0x479   : > { %925 = vmatpush.msrb.mxu2 %v905_v46  ;;  %v1045_v46 = vld [vmem:[%s1966_s10 + $0x18] sm:$0xff] }
 0x47a   : > { %1065 = vmatpush.msra.mxu3 %v1045_v46 }
 0x47b   : > { %v1357_v47 = vpop.eup %1356 }
 0x47c   : > { %1248 = vmatmul.msk.f32.vlgmr.msrb.gmra.mxu2 %vm628_vm8, %v1357_v47  ;;  %v901_v48 = vsel %vm628_vm8, %v1357_v47, 0.0  ;;  %v1043_v47 = vld [vmem:[%s1966_s10 + $0x8] sm:$0xff] }
 0x47d   : > { %902 = vadd.xlane.f32.xlu1 %v901_v48 }
 0x485   : > { %665 = vadd.xlane.f32.xlu1 %v664_v49 }
 0x4ea   : > { %v824_v50 = vpop.xlane.xlu2 %823 }
 0x4eb   : > { %1358 = vrcp.f32 %v824_v50  ;;  %v862_v55 = vand.u32 2147483648, %v824_v50  ;;  %v860_v57 = vand.u32 2147483647, %v824_v50  ;;  %vm856_vm1 = vweird.f32 %v824_v50 }
 0x4ed   : > { %v863_v61 = vor.u32 1.1754944e-38, %v862_v55  ;;  %vm861_vm3 = vcmp.eq.f32.partialorder %v860_v57, 8.507059e+37  ;;  %v1080_v55 = vld [vmem:[%s1968_s12 + $0x30] sm:$0xff]  ;;  %v1079_v57 = vld [vmem:[%s1968_s12 + $0x28] sm:$0xff] }
 0x4f0   : > { %v903_v51 = vpop.xlane.xlu1 %902 }
 0x4f1   : > { %v1359_v52 = vpop.eup %1358  ;;  %1360 = vrcp.f32 %v903_v51  ;;  %v941_v3 = vand.u32 2147483648, %v903_v51  ;;  %v939_v6 = vand.u32 2147483647, %v903_v51  ;;  %vm935_vm5 = vweird.f32 %v903_v51 }
 0x4f2   : > { %v852_v53 = vmul.f32 %v1359_v52, %v824_v50  ;;  %vm857_vm15 = vweird.f32 %v1359_v52 }
 0x4f3   : > { %vm858_vm2 = vmor %vm856_vm1, %vm857_vm15  ;;  %v942_v9 = vor.u32 1.1754944e-38, %v941_v3  ;;  %vm940_vm7 = vcmp.eq.f32.partialorder %v939_v6, 8.507059e+37 }
 0x4f4   : > { %v853_v54 = vsub.f32 1.0, %v852_v53 }
 0x4f6   : > { %v854_v56 = vmul.f32 %v1359_v52, %v853_v54  ;;  %v1081_v54 = vld [vmem:[%s1968_s12 + $0x38] sm:$0xff] }
 0x4f7   : > { %v1361_v58 = vpop.eup %1360  ;;  %1098 = vmatpush.msrb.mxu0 %v1081_v54 }
 0x4f8   : > { %v931_v59 = vmul.f32 %v1361_v58, %v903_v51  ;;  %v855_v60 = vadd.f32 %v1359_v52, %v854_v56  ;;  %vm936_vm4 = vweird.f32 %v1361_v58  ;;  %v666_v14 = vpop.xlane.xlu1 %665 }
 0x4f9   : > { %v848_v1 = vpop.f32.mrf.mxu3  ;;  %vm937_vm6 = vmor %vm935_vm5, %vm936_vm4  ;;  %1362 = vrcp.f32 %v666_v14  ;;  %v704_v25 = vand.u32 2147483648, %v666_v14  ;;  %vm698_vm10 = vweird.f32 %v666_v14  ;;  %v702_v26 = vand.u32 2147483647, %v666_v14  ;;  %1099 = vmatpush.msrb.mxu0 %v1080_v55 }
 0x4fa   : > { %v932_v62 = vsub.f32 1.0, %v931_v59  ;;  %v859_v63 = vsel %vm858_vm2, %v1359_v52, %v855_v60  ;;  %v1078_v59 = vld [vmem:[%s1968_s12 + $0x20] sm:$0xff]  ;;  %vm1086_vm5 = vcmask 523264  }
 0x4fb   : > { %v864_v2 = vsel %vm861_vm3, %v863_v61, %v859_v63  ;;  %v705_v28 = vor.u32 1.1754944e-38, %v704_v25  ;;  %vm703_vm12 = vcmp.eq.f32.partialorder %v702_v26, 8.507059e+37  ;;  %1100 = vmatpush.msrb.mxu0 %v1079_v57 }
 0x4fc   : > { %v865_v4 = vmul.f32 %v864_v2, %v848_v1  ;;  %v933_v5 = vmul.f32 %v1361_v58, %v932_v62  ;;  %v1077_v62 = vld [vmem:[%s1968_s12 + $0x18] sm:$0xff] }
 0x4fd   : > { %1101 = vmatpush.msrb.mxu0 %v1078_v59 }
 0x4fe   : > { %950 = vrot.lane.b32.xlu1 %v865_v4, %s1549_s29  ;;  %v934_v7 = vadd.f32 %v1361_v58, %v933_v5  ;;  %s533_s29 = scalar_lea.vmem [#allocation8], %s1233_s15  ;;  %s1478_s15 = scalar_lea.hbm %s2005_s18, 16 }
 0x4ff   : > { %v927_v11 = vpop.f32.mrf.mxu2  ;;  %v1363_v19 = vpop.eup %1362  ;;  %1102 = vmatpush.msrb.mxu0 %v1077_v62  ;;  %p1480_p11 = scmp.lt.s32.totalorder %s1478_s15, %s1474_s27 }
 0x500   : > { %v938_v10 = vsel %vm937_vm6, %v1361_v58, %v934_v7  ;;  %v694_v21 = vmul.f32 %v1363_v19, %v666_v14  ;;  %vm699_vm9 = vweird.f32 %v1363_v19  ;;  %v1338_v7 = vld [vmem:[%s2001_s21] ss:$0 sm:$0xff] }
 0x501   : > { %v943_v12 = vsel %vm940_vm7, %v942_v9, %v938_v10  ;;  %vm700_vm11 = vmor %vm698_vm10, %vm699_vm9  ;;  %p1481_p10 = por %p1480_p11, %p1479_p2 }
 0x502   : > { %v944_v13 = vmul.f32 %v943_v12, %v927_v11  ;;  %v695_v22 = vsub.f32 1.0, %v694_v21  ;;  %v1075_v21 = vld [vmem:[%s1968_s12 + $0x8] sm:$0xff] }
 0x503   : > { %p1482_p12 = pnand %p1481_p10, %p1477_p8 }
 0x504   : > { %954 = vrot.lane.b32.xlu0 %v944_v13, %s1550_s23  ;;  %v696_v23 = vmul.f32 %v1363_v19, %v695_v22  ;;  %v1074_v22 = vld [vmem:[%s1968_s12] sm:$0xff]  ;;  %s1125_s23 = sshll.u32 %s533_s29, 4  ;;  %s1126_s23 = int_to_ptr.vmem [resolvable:$true] %s1125_s23 }
 0x506   : > { %v697_v24 = vadd.f32 %v1363_v19, %v696_v23  ;;  %v1340_v23 = vld [vmem:[%s2003_s8] ss:$0 sm:$0xff] }
 0x508   : > { %v701_v27 = vsel %vm700_vm11, %v1363_v19, %v697_v24  ;;  %v1076_v19 = vld [vmem:[%s1968_s12 + $0x10] sm:$0xff] }
 0x509   : > { %v706_v30 = vsel %vm703_vm12, %v705_v28, %v701_v27  ;;  %1103 = vmatpush.msrb.mxu0 %v1076_v19  ;;  %v1341_v27 = vld [vmem:[%s2004_s25] ss:$0 sm:$0xff] }
 0x50a   : > { %v707_v31 = vmul.f32 %v706_v30, %v1829_v20 }
 0x50b   : > { %1104 = vmatpush.msrb.mxu0 %v1075_v21 }
 0x50c   : > { %v957_v33 = vsel %vm628_vm8, %v707_v31, %v947_v29 }
 0x50d   : > { %1105 = vmatpush.msrb.mxu0 %v1074_v22 }
 0x570   : > { %v951_v32 = vpop.permute.xlu1 %950 }
 0x571   : > { %v959_v34 = vsel %vm958_vm13, %v957_v33, %v951_v32 }
 0x576   : > { %v955_v35 = vpop.permute.xlu0 %954 }
 0x577   : > { %v961_v36 = vsel %vm960_vm14, %v959_v34, %v955_v35 }
 0x578   : > { %1249 = vmatmul.msk.f32.vlgmr.msra.gmra.mxu1 %vm537_vm0, %v961_v36 }
 0x5f5   : > { %v990_v38 = vpop.f32.mrf.mxu1 }
 0x5f6   : > { %v991_v39 = vadd.f32 %v1337_v37, %v990_v38 }
 0x5f8   : > { %v1863_v40 = vadd.f32 %v991_v39, %v1765_v0  ;;  %v1044_v0 = vld [vmem:[%s1966_s10 + $0x10] sm:$0xff] }
 0x5f9   : > { %1066 = vmatpush.msra.mxu3 %v1044_v0 }
 0x5fa   : > { %v996_v20 = vsel %vm537_vm0, %v1863_v40, 0.0 }
 0x5fb   : > { %997 = vadd.xlane.f32.xlu2 %v996_v20  ;;  %1067 = vmatpush.msra.mxu3 %v1043_v47 }
 0x66e   : > { %v998_v41 = vpop.xlane.xlu2 %997 }
 0x66f   : > { %v999_v42 = vmul.f32 %v998_v41, %v1769_v8  ;;  %v1042_v8 = vld [vmem:[%s1966_s10] sm:$0xff] }
 0x670   : > { %1068 = vmatpush.msra.mxu3 %v1042_v8 }
 0x671   : > { %v1000_v43 = vsub.f32 %v1863_v40, %v999_v42 }
 0x673   : > { %v1001_v44 = vmul.f32 %v1000_v43, %v1000_v43  ;;  %v1021_v13 = vmul.f32 %v1338_v7, %v1000_v43 }
 0x675   : > { %v1002_v45 = vsel %vm537_vm0, %v1001_v44, 0.0 }
 0x676   : > { %1003 = vadd.xlane.f32.xlu0 %v1002_v45 }
 0x6e9   : > { %v1004_v48 = vpop.xlane.xlu0 %1003 }
 0x6ea   : > { %v1005_v49 = vmul.f32 0.032258064, %v1004_v48 }
 0x6ec   : > { %1364 = vrsqrt.f32 %v1005_v49  ;;  %vm1013_vm8 = vcmp.eq.f32.partialorder %v1005_v49, inf  ;;  %v1016_v61 = vand.u32 2147483648, %v1005_v49  ;;  %vm1015_vm15 = vcmp.eq.f32.partialorder %v1005_v49, 0.0 }
 0x6f2   : > { %v1365_v50 = vpop.eup %1364 }
 0x6f3   : > { %v1007_v51 = vmul.f32 %v1365_v50, %v1005_v49 }
 0x6f5   : > { %v1008_v52 = vmul.f32 %v1365_v50, %v1007_v51 }
 0x6f7   : > { %v1009_v53 = vmul.f32 0.5, %v1008_v52 }
 0x6f9   : > { %v1010_v56 = vsub.f32 1.5, %v1009_v53 }
 0x6fb   : > { %v1011_v58 = vmul.f32 %v1365_v50, %v1010_v56 }
 0x6fd   : > { %v1012_v60 = vmul.f32 %v1011_v58, %v1005_v49 }
 0x6ff   : > { %v1014_v63 = vsel %vm1013_vm8, %v1005_v49, %v1012_v60 }
 0x700   : > { %v1017_v1 = vsel %vm1015_vm15, %v1016_v61, %v1014_v63 }
 0x701   : > { %v1022_v2 = vadd.f32 1e-06, %v1017_v1 }
 0x703   : > { %1366 = vrcp.f32 %v1022_v2  ;;  %v1034_v6 = vand.u32 2147483648, %v1022_v2  ;;  %v1032_v10 = vand.u32 2147483647, %v1022_v2  ;;  %vm1028_vm2 = vweird.f32 %v1022_v2 }
 0x705   : > { %v1035_v12 = vor.u32 1.1754944e-38, %v1034_v6  ;;  %vm1033_vm4 = vcmp.eq.f32.partialorder %v1032_v10, 8.507059e+37 }
 0x709   : > { %v1367_v3 = vpop.eup %1366 }
 0x70a   : > { %v1024_v4 = vmul.f32 %v1367_v3, %v1022_v2  ;;  %vm1029_vm1 = vweird.f32 %v1367_v3 }
 0x70b   : > { %vm1030_vm3 = vmor %vm1028_vm2, %vm1029_vm1 }
 0x70c   : > { %v1025_v5 = vsub.f32 1.0, %v1024_v4 }
 0x70e   : > { %v1026_v9 = vmul.f32 %v1367_v3, %v1025_v5 }
 0x710   : > { %v1027_v11 = vadd.f32 %v1367_v3, %v1026_v9 }
 0x712   : > { %v1031_v14 = vsel %vm1030_vm3, %v1367_v3, %v1027_v11 }
 0x713   : > { %v1036_v16 = vsel %vm1033_vm4, %v1035_v12, %v1031_v14 }
 0x714   : > { %v1037_v17 = vmul.f32 %v1036_v16, %v1021_v13 }
 0x716   : > { %v1041_v18 = vadd.f32 %v1339_v15, %v1037_v17 }
 0x718   : > { %1250 = vmatmul.msk.f32.vlgmr.msra.gmra.mxu3 %vm537_vm0, %v1041_v18 }
 0x79b   : > { %v1070_v24 = vpop.f32.mrf.mxu3 }
 0x79c   : > { %v1071_v25 = vadd.f32 %v1340_v23, %v1070_v24 }
 0x79e   : > { %v1073_v26 = vmax.f32 %v1071_v25, 0.0 }
 0x7a0   : > { %1251 = vmatmul.msk.f32.vlgmr.msrb.gmra.mxu0 %vm1086_vm5, %v1073_v26 }
 0x81d   : > { %v1107_v28 = vpop.f32.mrf.mxu0 }
 0x81e   : > { %v1108_v29 = vadd.f32 %v1341_v27, %v1107_v28 }
 0x820   : > { %v1110_v30 = vadd.f32 %v1108_v29, %v1863_v40 }
 0x822   : > { %1111 = vst.msk [vmem:[%s533_s29] sm:$0xff] %vm537_vm0, %v1110_v30 }
 0x823   : > { %1485 = shalt.err (!%p1482_p12)
}
 0x824   : > { %1264 = dma.vmem_to_hbm [thread:$0]  (%p1693_p7), %s1126_s23, 128, %s1128_s9, %s1113_s17  }
 0x825 PF: > { %s2007_s13 = sld [smem:[#allocation13_spill]] }
 0x826   : > { %s2009_s24 = sld [smem:[#allocation15_spill]] }
 0x82b   : > { %s1139_s19 = sand.u32 1, %s2007_s13  }
 0x82c   : > { %p2010_p13 = scmp.ge.s32.totalorder %s2009_s24, 2  ;;  %s1140_s25 = scalar_lea.sflag [#allocation4], %s1139_s19 }
 0x82e   : > { %p1278_p9 = pnand %p2010_p13, %p1661_p6 }
 0x830   : > { %p1279_p0 = pneg %p1278_p9 }
 0x832   : > { %1515 = dma.done.wait (%p1279_p0), %s1140_s25, 128  }
 0x833   : > { %1517 = vsyncadd (%p1279_p0), %s1140_s25, 4294967168  ;;  %s2011_s16 = sld [smem:[#allocation17_spill]]  ;;  %s2014_s29 = smov %s1524_s30 }
 0x834   : > { %s2012_s28 = sld [smem:[#allocation14_spill]] }
 0x835   : > { %s2013_s15 = sld [smem:[#allocation18_spill]] }
 0x839   : > { %p30_p3 = scmp.ge.s32.totalorder %s2011_s16, 4  }
 0x83a   : > { %s2015_s30 = smov %s2012_s28 }
 0x83b   :  { %32 = sbr.rel (!%p30_p3) target bundleno = 14 (0xe), region = 138 }
 0x840   :  { %1146 = vsyncpa [#allocation3], 1 }
 0x841   :  { %1148 = vsyncpa [#allocation3 + $0x1], 1 }
 0x842   :  { %1149 = vsyncpa [#allocation6], 1 }
 0x843   :  { %1151 = vsyncpa [#allocation6 + $0x1], 1 }
 0x844   :  { %1152 = vsyncpa [#allocation4], 1 }
 0x845   :  { %1154 = vsyncpa [#allocation4 + $0x1], 1 }

</bundles_post_ra>
